<compile_context>
chip_gen: v7x
topology: tpu7x:2x2x1
jax: 0.10.0
libtpu: 0.0.40
codegen_flags: <defaults>
</compile_context>

<pallas_src>
import math

import jax
import jax.numpy as jnp
from jax.experimental import pallas as pl
from jax.experimental.pallas import tpu as pltpu


def attention_kernel(x_ref, wqkv_ref, wo_ref, b_ref, o_ref, acc_ref):
    """Grid step = (batch element b, head h).

    x_ref   : (1, N, E)     bf16, resident across the h axis
    wqkv_ref: (1, E, 3*Dh)  bf16, head h's packed [Q|K|V] projection
    wo_ref  : (1, Dh, E)    bf16, head h's slice of the output projection
    b_ref   : (1, E)        f32 bias
    o_ref   : (1, N, E)     output block (same block for every h of a given b)
    acc_ref : (N, E)        f32 VMEM scratch accumulating the head sum
    """
    h = pl.program_id(1)
    num_heads = pl.num_programs(1)
    dh = wqkv_ref.shape[2] // 3
    scale = 1.0 / math.sqrt(dh)

    x = x_ref[0]                                   # (N, E)    bf16
    w_qkv = wqkv_ref[0]                            # (E, 3*Dh) bf16

    # Packed QKV projection for this head: one 2-D GEMM, f32 accumulation.
    qkv = jnp.dot(x, w_qkv, preferred_element_type=jnp.float32)   # (N, 3*Dh)

    # Scale Q once (N*Dh elements) rather than the (N, N) scores.
    q = (qkv[:, :dh] * scale).astype(jnp.bfloat16)                # (N, Dh)
    k = qkv[:, dh:2 * dh].astype(jnp.bfloat16)                    # (N, Dh)
    v = qkv[:, 2 * dh:].astype(jnp.bfloat16)                      # (N, Dh)

    # Scores: contract the Dh (last) dims — no explicit K transpose.
    s = jnp.einsum('qd,kd->qk', q, k,
                   preferred_element_type=jnp.float32)            # (N, N) f32

    # Numerically-stable softmax in f32; normalization via the EUP reciprocal.
    s = s - jnp.max(s, axis=-1, keepdims=True)
    p = jnp.exp(s)
    p = p * pl.reciprocal(jnp.sum(p, axis=-1, keepdims=True), approx=True)

    # Attention output for this head, then its slice of the output projection
    # (the head-concat is folded into Wo_h; heads sum via the grid axis).
    o = jnp.dot(p.astype(jnp.bfloat16), v,
                preferred_element_type=jnp.float32)               # (N, Dh)
    out_h = jnp.dot(o.astype(jnp.bfloat16), wo_ref[0],
                    preferred_element_type=jnp.float32)           # (N, E)

    @pl.when(h == 0)
    def _():
        acc_ref[...] = out_h

    @pl.when(h > 0)
    def _():
        acc_ref[...] = acc_ref[...] + out_h

    @pl.when(h == num_heads - 1)
    def _():
        o_ref[0] = (acc_ref[...] + b_ref[...]).astype(o_ref.dtype)


def attention_pallas(x, qkv_weight, proj_weight, proj_bias, num_heads):
    """x: (B, N, E); qkv_weight: (3E, E); proj_weight: (E, E); proj_bias: (E,)."""
    B, N, E = x.shape
    H = num_heads
    Dh = E // H
    assert H * Dh == E
    out_dtype = x.dtype

    # ---- Head-major, bf16 weight slabs (one-time wrapper prep). ----
    wq, wk, wv = qkv_weight[:E], qkv_weight[E:2 * E], qkv_weight[2 * E:]

    def head_major(w):                 # (H*Dh, E_in) -> (H, E_in, Dh)
        return w.reshape(H, Dh, E).transpose(0, 2, 1)

    # Per-head packed [Q|K|V] projection: (H, E, 3*Dh), bf16.
    w_qkv = jnp.concatenate(
        [head_major(wq), head_major(wk), head_major(wv)], axis=-1
    ).astype(jnp.bfloat16)
    # Per-head slice of the output projection (head concat folded in): (H, Dh, E).
    w_o = proj_weight.T.reshape(H, Dh, E).astype(jnp.bfloat16)
    bias = proj_bias.reshape(1, E).astype(jnp.float32)
    x_bf16 = x.astype(jnp.bfloat16)

    # Generation-aware VMEM budget (~48 MiB on v7x, ~96 MiB on v5e/v6e).
    try:
        vmem_cap = int(pltpu.get_tpu_info().vmem_capacity_bytes)
    except Exception:
        vmem_cap = 64 * 1024 * 1024
    vmem_limit = min(vmem_cap * 3 // 4, 100 * 1024 * 1024)

    # Advisory cost estimate.
    flops = 8 * B * N * E * E + 4 * B * N * N * E
    transcendentals = B * H * N * N + B * H * N
    bytes_accessed = (2 * B * N * E        # x (bf16), read once per sequence
                      + 8 * B * E * E      # bf16 weights, re-streamed per b
                      + 4 * E              # bias
                      + 4 * B * N * E)     # f32 output

    grid = (B, H)   # batch: parallel (megacore); heads: innermost reduction.

    return pl.pallas_call(
        attention_kernel,
        out_shape=jax.ShapeDtypeStruct((B, N, E), out_dtype),
        grid_spec=pltpu.PrefetchScalarGridSpec(
            num_scalar_prefetch=0,
            grid=grid,
            in_specs=[
                # x: constant in h -> DMA'd once per sequence, stays resident
                # for the whole head loop.
                pl.BlockSpec((1, N, E), lambda b, h: (b, 0, 0)),        # x
                # Per-head weight blocks: only ~2 heads' weights live in VMEM
                # (vs 2x the full slabs); head h+1 is prefetched during h.
                pl.BlockSpec((1, E, 3 * Dh), lambda b, h: (h, 0, 0)),   # Wqkv_h
                pl.BlockSpec((1, Dh, E), lambda b, h: (h, 0, 0)),       # Wo_h
                pl.BlockSpec((1, E), lambda b, h: (0, 0)),              # bias
            ],
            out_specs=pl.BlockSpec((1, N, E), lambda b, h: (b, 0, 0)),
            scratch_shapes=[pltpu.VMEM((N, E), jnp.float32)],
        ),
        compiler_params=pltpu.CompilerParams(
            dimension_semantics=("parallel", "arbitrary"),
            vmem_limit_bytes=vmem_limit,
        ),
        cost_estimate=pl.CostEstimate(
            flops=flops,
            transcendentals=transcendentals,
            bytes_accessed=bytes_accessed,
        ),
    )(x_bf16, w_qkv, w_o, bias)


def attention_ref(x, qkv_weight, proj_weight, proj_bias, num_heads):
    """Pure-JAX f32 reference mirroring the PyTorch forward."""
    B, N, E = x.shape
    head_dim = E // num_heads
    qkv = x @ qkv_weight.T                                   # (B, N, 3E)
    Q, K, V = jnp.split(qkv, 3, axis=-1)

    def split_heads(t):
        return t.reshape(B, N, num_heads, head_dim).transpose(0, 2, 1, 3)

    Q, K, V = split_heads(Q), split_heads(K), split_heads(V)
    s = jnp.einsum('bhqd,bhkd->bhqk', Q, K) / math.sqrt(head_dim)
    a = jax.nn.softmax(s, axis=-1)
    o = jnp.einsum('bhqk,bhkd->bhqd', a, V)
    o = o.transpose(0, 2, 1, 3).reshape(B, N, E)
    return o @ proj_weight.T + proj_bias


if __name__ == "__main__":
    # Small shapes consistent with the module: batch=2, seq=8, embed=32, heads=4.
    B, N, E, H = 2, 8, 32, 4
    key = jax.random.PRNGKey(0)
    kx, kw1, kw2, kb = jax.random.split(key, 4)

    x = jax.random.normal(kx, (B, N, E), dtype=jnp.float32)

    # Deterministic parameter init (PyTorch-Linear-style uniform bounds).
    bound = 1.0 / math.sqrt(E)
    qkv_weight = jax.random.uniform(kw1, (3 * E, E), jnp.float32, -bound, bound)
    proj_weight = jax.random.uniform(kw2, (E, E), jnp.float32, -bound, bound)
    proj_bias = jax.random.uniform(kb, (E,), jnp.float32, -bound, bound)

    out = attention_pallas(x, qkv_weight, proj_weight, proj_bias, H)
    out = jax.block_until_ready(out)

    ref = attention_ref(x, qkv_weight, proj_weight, proj_bias, H)
    assert out.shape == (B, N, E)
    # Tolerance accommodates the bf16 MXU operands (f32 accumulation) and the
    # approximate EUP reciprocal in the softmax (~1e-2 combined drift vs the
    # f32 reference); structural errors (wrong head layout / weights) would
    # produce O(0.1-1) mismatches.
    assert jnp.allclose(out, ref, atol=2e-2, rtol=2e-2), (
        f"mismatch vs reference: max abs err = {jnp.max(jnp.abs(out - ref))}")

    print("KERNEL_OK")
</pallas_src>

<mosaic_0001>
module attributes {stable_mosaic.version = 11 : i64} {
  func.func @attention_kernel(%arg0: i32, %arg1: i32, %arg2: memref<1x8x32xbf16, #tpu.memory_space<vmem>>, %arg3: memref<1x32x24xbf16, #tpu.memory_space<vmem>>, %arg4: memref<1x8x32xbf16, #tpu.memory_space<vmem>>, %arg5: memref<1x32xf32, #tpu.memory_space<vmem>>, %arg6: memref<1x8x32xf32, #tpu.memory_space<vmem>>, %arg7: memref<8x32xf32, #tpu.memory_space<vmem>>) attributes {dimension_semantics = [#tpu.dimension_semantics<parallel>, #tpu.dimension_semantics<arbitrary>], iteration_bounds = array<i64: 2, 4>, scalar_prefetch = 0 : i64, scratch_operands = 1 : i64, tpu.core_type = #tpu.core_type<tc>, window_params = [{transform_indices = @transform_0, window_bounds = array<i64: 1, 8, 32>}, {transform_indices = @transform_1, window_bounds = array<i64: 1, 32, 24>}, {transform_indices = @transform_2, window_bounds = array<i64: 1, 8, 32>}, {pipeline_mode = #tpu.pipeline_mode<synchronous>, transform_indices = @transform_3, window_bounds = array<i64: 1, 32>}, {transform_indices = @transform_4, window_bounds = array<i64: 1, 8, 32>}]} {
    %c0 = arith.constant 0 : index
    %c0_0 = arith.constant 0 : index
    %c0_1 = arith.constant 0 : index
    %0 = vector.load %arg2[%c0, %c0_0, %c0_1] : memref<1x8x32xbf16, #tpu.memory_space<vmem>>, vector<1x8x32xbf16>
    %1 = vector.shape_cast %0 : vector<1x8x32xbf16> to vector<8x32xbf16>
    %c0_2 = arith.constant 0 : index
    %c0_3 = arith.constant 0 : index
    %c0_4 = arith.constant 0 : index
    %2 = vector.load %arg3[%c0_2, %c0_3, %c0_4] : memref<1x32x24xbf16, #tpu.memory_space<vmem>>, vector<1x32x24xbf16>
    %3 = vector.shape_cast %2 : vector<1x32x24xbf16> to vector<32x24xbf16>
    %cst = arith.constant dense<0.000000e+00> : vector<8x24xf32>
    %4 = tpu.matmul %1, %3, %cst {dimension_numbers = #tpu.dot_dimension_numbers<[1], [0], [0], [1], [0, 0, 1, 1], [], []>} : vector<8x32xbf16>, vector<32x24xbf16>, vector<8x24xf32> -> vector<8x24xf32>
    %5 = vector.extract_strided_slice %4 {offsets = [0, 0], sizes = [8, 8], strides = [1, 1]} : vector<8x24xf32> to vector<8x8xf32>
    %cst_5 = arith.constant 0.353553385 : f32
    %6 = vector.broadcast %cst_5 : f32 to vector<8x8xf32>
    %7 = arith.mulf %5, %6 : vector<8x8xf32>
    %8 = arith.truncf %7 : vector<8x8xf32> to vector<8x8xbf16>
    %9 = vector.extract_strided_slice %4 {offsets = [0, 8], sizes = [8, 8], strides = [1, 1]} : vector<8x24xf32> to vector<8x8xf32>
    %10 = arith.truncf %9 : vector<8x8xf32> to vector<8x8xbf16>
    %11 = vector.extract_strided_slice %4 {offsets = [0, 16], sizes = [8, 8], strides = [1, 1]} : vector<8x24xf32> to vector<8x8xf32>
    %12 = arith.truncf %11 : vector<8x8xf32> to vector<8x8xbf16>
    "tpu.trace_start"() <{level = 10 : i32, message = "qd,kd->qk"}> : () -> ()
    %cst_6 = arith.constant dense<0.000000e+00> : vector<8x8xf32>
    %13 = tpu.matmul %8, %10, %cst_6 {dimension_numbers = #tpu.dot_dimension_numbers<[1], [1], [0], [0], [0, 0, 1, 0], [], []>} : vector<8x8xbf16>, vector<8x8xbf16>, vector<8x8xf32> -> vector<8x8xf32>
    "tpu.trace_stop"() : () -> ()
    %cst_7 = arith.constant dense<0xFF800000> : vector<8xf32>
    %14 = vector.multi_reduction <maximumf>, %13, %cst_7 [1] : vector<8x8xf32> to vector<8xf32>
    %15 = vector.shape_cast %14 : vector<8xf32> to vector<8x1xf32>
    %16 = vector.broadcast %15 : vector<8x1xf32> to vector<8x8xf32>
    %17 = arith.subf %13, %16 : vector<8x8xf32>
    %18 = math.exp %17 : vector<8x8xf32>
    %cst_8 = arith.constant dense<0.000000e+00> : vector<8xf32>
    %19 = vector.multi_reduction <add>, %18, %cst_8 [1] : vector<8x8xf32> to vector<8xf32>
    %20 = vector.shape_cast %19 : vector<8xf32> to vector<8x1xf32>
    %21 = tpu.reciprocal %20 {approx = true} : vector<8x1xf32> -> vector<8x1xf32>
    %22 = vector.broadcast %21 : vector<8x1xf32> to vector<8x8xf32>
    %23 = arith.mulf %18, %22 : vector<8x8xf32>
    %24 = arith.truncf %23 : vector<8x8xf32> to vector<8x8xbf16>
    %cst_9 = arith.constant dense<0.000000e+00> : vector<8x8xf32>
    %25 = tpu.matmul %24, %12, %cst_9 {dimension_numbers = #tpu.dot_dimension_numbers<[1], [0], [0], [1], [0, 0, 1, 1], [], []>} : vector<8x8xbf16>, vector<8x8xbf16>, vector<8x8xf32> -> vector<8x8xf32>
    %26 = arith.truncf %25 : vector<8x8xf32> to vector<8x8xbf16>
    %c0_10 = arith.constant 0 : index
    %c0_11 = arith.constant 0 : index
    %c0_12 = arith.constant 0 : index
    %27 = vector.load %arg4[%c0_10, %c0_11, %c0_12] : memref<1x8x32xbf16, #tpu.memory_space<vmem>>, vector<1x8x32xbf16>
    %28 = vector.shape_cast %27 : vector<1x8x32xbf16> to vector<8x32xbf16>
    %cst_13 = arith.constant dense<0.000000e+00> : vector<8x32xf32>
    %29 = tpu.matmul %26, %28, %cst_13 {dimension_numbers = #tpu.dot_dimension_numbers<[1], [0], [0], [1], [0, 0, 1, 1], [], []>} : vector<8x8xbf16>, vector<8x32xbf16>, vector<8x32xf32> -> vector<8x32xf32>
    %c0_i32 = arith.constant 0 : i32
    %30 = arith.cmpi eq, %arg1, %c0_i32 : i32
    %31 = arith.extui %30 : i1 to i32
    %c0_i32_14 = arith.constant 0 : i32
    %32 = arith.cmpi ne, %31, %c0_i32_14 : i32
    scf.if %32 {
      %c0_18 = arith.constant 0 : index
      %c0_19 = arith.constant 0 : index
      %39 = vector.load %arg7[%c0_18, %c0_19] : memref<8x32xf32, #tpu.memory_space<vmem>>, vector<8x32xf32>
      tpu.vector_store %arg7[%c0_18, %c0_19], %29 {strides = array<i32>} : memref<8x32xf32, #tpu.memory_space<vmem>>, vector<8x32xf32>,
    } else {
    }
    %c0_i32_15 = arith.constant 0 : i32
    %33 = arith.cmpi sgt, %arg1, %c0_i32_15 : i32
    %34 = arith.extui %33 : i1 to i32
    %c0_i32_16 = arith.constant 0 : i32
    %35 = arith.cmpi ne, %34, %c0_i32_16 : i32
    scf.if %35 {
      %c0_18 = arith.constant 0 : index
      %c0_19 = arith.constant 0 : index
      %39 = vector.load %arg7[%c0_18, %c0_19] : memref<8x32xf32, #tpu.memory_space<vmem>>, vector<8x32xf32>
      %40 = arith.addf %39, %29 : vector<8x32xf32>
      %c0_20 = arith.constant 0 : index
      %c0_21 = arith.constant 0 : index
      %41 = vector.load %arg7[%c0_20, %c0_21] : memref<8x32xf32, #tpu.memory_space<vmem>>, vector<8x32xf32>
      tpu.vector_store %arg7[%c0_20, %c0_21], %40 {strides = array<i32>} : memref<8x32xf32, #tpu.memory_space<vmem>>, vector<8x32xf32>,
    } else {
    }
    %c3_i32 = arith.constant 3 : i32
    %36 = arith.cmpi eq, %arg1, %c3_i32 : i32
    %37 = arith.extui %36 : i1 to i32
    %c0_i32_17 = arith.constant 0 : i32
    %38 = arith.cmpi ne, %37, %c0_i32_17 : i32
    scf.if %38 {
      %c0_18 = arith.constant 0 : index
      %c0_19 = arith.constant 0 : index
      %39 = vector.load %arg7[%c0_18, %c0_19] : memref<8x32xf32, #tpu.memory_space<vmem>>, vector<8x32xf32>
      %c0_20 = arith.constant 0 : index
      %c0_21 = arith.constant 0 : index
      %40 = vector.load %arg5[%c0_20, %c0_21] : memref<1x32xf32, #tpu.memory_space<vmem>>, vector<1x32xf32>
      %41 = vector.broadcast %40 : vector<1x32xf32> to vector<8x32xf32>
      %42 = arith.addf %39, %41 : vector<8x32xf32>
      %c0_22 = arith.constant 0 : index
      %c0_23 = arith.constant 0 : index
      %c0_24 = arith.constant 0 : index
      %43 = vector.load %arg6[%c0_22, %c0_23, %c0_24] : memref<1x8x32xf32, #tpu.memory_space<vmem>>, vector<1x8x32xf32>
      %44 = vector.shape_cast %43 : vector<1x8x32xf32> to vector<8x32xf32>
      %45 = vector.shape_cast %42 : vector<8x32xf32> to vector<1x8x32xf32>
      tpu.vector_store %arg6[%c0_22, %c0_23, %c0_24], %45 {strides = array<i32>} : memref<1x8x32xf32, #tpu.memory_space<vmem>>, vector<1x8x32xf32>,
    } else {
    }
    return
  }
  func.func @transform_0(%arg0: i32, %arg1: i32) -> (i32, i32, i32) {
    %c0_i32 = arith.constant 0 : i32
    %c0_i32_0 = arith.constant 0 : i32
    %c0_i32_1 = arith.constant 0 : i32
    return %arg0, %c0_i32, %c0_i32_0 : i32, i32, i32
  }
  func.func @transform_1(%arg0: i32, %arg1: i32) -> (i32, i32, i32) {
    %c0_i32 = arith.constant 0 : i32
    %c0_i32_0 = arith.constant 0 : i32
    %c0_i32_1 = arith.constant 0 : i32
    return %arg1, %c0_i32, %c0_i32_0 : i32, i32, i32
  }
  func.func @transform_2(%arg0: i32, %arg1: i32) -> (i32, i32, i32) {
    %c0_i32 = arith.constant 0 : i32
    %c0_i32_0 = arith.constant 0 : i32
    %c0_i32_1 = arith.constant 0 : i32
    return %arg1, %c0_i32, %c0_i32_0 : i32, i32, i32
  }
  func.func @transform_3(%arg0: i32, %arg1: i32) -> (i32, i32) {
    %c0_i32 = arith.constant 0 : i32
    %c0_i32_0 = arith.constant 0 : i32
    %c0_i32_1 = arith.constant 0 : i32
    return %c0_i32, %c0_i32_0 : i32, i32
  }
  func.func @transform_4(%arg0: i32, %arg1: i32) -> (i32, i32, i32) {
    %c0_i32 = arith.constant 0 : i32
    %c0_i32_0 = arith.constant 0 : i32
    %c0_i32_1 = arith.constant 0 : i32
    return %arg0, %c0_i32, %c0_i32_0 : i32, i32, i32
  }
}

</mosaic_0001>

<bundles_post_ra>
// kernel: tpu_custom_call.1
= control target key start
LH: loop header
LB: loop body
LE: loop exit
PB: predicated region body
PF: predicated region fallthrough
CT: control target
= control target key end

     0   :  { %9 = vsyncpa [#allocation4], 0  ;;  %s1032_s0 = inlined_call_operand.vmem [shape: bf16[2,8,32], index: 0, kind: input, shape index: {}]   ;;  %s1033_s1 = inlined_call_operand.vmem [shape: bf16[4,32,24], index: 1, kind: input, shape index: {}]   ;;  %s1034_s2 = inlined_call_operand.vmem [shape: bf16[4,8,32], index: 2, kind: input, shape index: {}]   ;;  %s1035_s3 = inlined_call_operand.vmem [shape: f32[1,32], index: 3, kind: input, shape index: {}]   ;;  %s1036_s4 = inlined_call_operand.hbm [shape: f32[2,8,32], index: 4, kind: output, shape index: {}]  }
   0x1   :  { %11 = vsyncpa [#allocation4 + $0x1], 0  ;;  %s867_s15 = smov 0   ;;  %s869_s16 = smov 0  }
   0x2   :  { %s871_s17 = smov 0   ;;  %s873_s18 = smov 0  }
   0x3   :  { %s875_s19 = smov 0   ;;  %s877_s20 = smov 0  }
   0x4   :  { %s879_s21 = smov 0   ;;  %s881_s22 = smov 0  }
   0x5 LB: > { %s600_s23 = sadd.s32 4294967295, %s835_s22   ;;  %s601_s24 = sadd.s32 4294967294, %s835_s22   ;;  %s835_s22 = sphi %s881_s22, %s17_s22   ;;  %s831_s21 = sphi %s879_s21, %s1045_s21   ;;  %s827_s20 = sphi %s877_s20, %s1044_s20   ;;  %s823_s19 = sphi %s875_s19, %s1043_s19   ;;  %s819_s18 = sphi %s873_s18, %s1042_s18   ;;  %s815_s17 = sphi %s871_s17, %s1041_s17   ;;  %s811_s16 = sphi %s869_s16, %s1040_s16   ;;  %s807_s15 = sphi %s867_s15, %s1039_s15  }
   0x6   : > { %s26_s25 = sadd.s32 1, %s827_s20  ;;  %s29_s26 = sadd.s32 1, %s831_s21 }
   0x7   : > { %p27_p0 = scmp.ge.s32.totalorder %s26_s25, 4  ;;  %p145_p1 = scmp.ne.s32.totalorder %s815_s17, %s811_s16 }
   0x8   : > { %p146_p2 = scmp.eq.s32.totalorder %s600_s23, 7  ;;  %p151_p4 = scmp.ne.s32.totalorder %s811_s16, %s807_s15 }
   0x9   : > { %s1047_s25 = smov (%p27_p0, %s26_s25), 0  ;;  %s1049_s26 = smov (!%p27_p0, %s29_s26), %s831_s21 }
   0xa   : > { %p916_p3 = por %p146_p2, %p145_p1  ;;  %p31_p5 = scmp.ge.s32.totalorder %s1049_s26, 2 }
   0xb   : > { %p152_p6 = scmp.eq.s32.totalorder %s601_s24, 7  ;;  %p604_p7 = scmp.ge.s32.totalorder %s835_s22, 1 }
   0xc   : > { %p195_p8 = scmp.lt.s32.totalorder %s835_s22, 9  ;;  %s1051_s26 = smov (%p31_p5, %s1049_s26), 0 }
   0xd   : > { %p926_p9 = por %p152_p6, %p151_p4  ;;  %s132_s29 = ssub.s32 %s831_s21, %s1051_s26 }
   0xe   : > { %p196_p10 = pnand %p604_p7, %p195_p8  ;;  %s135_s30 = sadd.s32 1, %s815_s17 }
   0xf   : > { %p133_p11 = scmp.eq.s32.totalorder %s132_s29, 0  ;;  %s226_s6 = sand.u32 (!%p196_p10), 1, %s811_s16   ;;  %v837_v0 = vmov (!%p196_p10), 0.0   ;;  %vm838_vm0 = vmmov (!%p196_p10), 0   ;;  %vm260_vm1 = vcmask (!%p196_p10), 261120   ;;  %vm310_vm2 = vcmask (!%p196_p10), 64512  }
  0x10   : > { %199 = sbr.rel (%p196_p10) target bundleno = 1371 (0x55b), region = 36  ;;  %p233_p12 = scmp.lt.s32.totalorder (!%p196_p10), %s819_s18, 3  ;;  %634 = vmatprep.subr.bf16.mxu0 (!%p196_p10), %v837_v0  ;;  %638 = vmatprep.mubr.msk.bf16.mxu0 (!%p196_p10), %vm838_vm0, %v837_v0  ;;  %vm374_vm3 = vcmask (!%p196_p10), 1043456  }
  0x11   : > { %s934_s5 = scalar_select %p133_p11, %s815_s17, %s135_s30  }
  0x12   : > { %s940_s7 = sshll.u32 (!%p196_p10), %s226_s6, 3  ;;  %p229_p13 = scmp.lt.s32.totalorder (!%p196_p10), %s823_s19, 1  ;;  %642 = vmatprep.subr.bf16.mxu1 (!%p196_p10), %v837_v0  ;;  %644 = vmatprep.mubr.msk.bf16.mxu1 (!%p196_p10), %vm838_vm0, %v837_v0 }
  0x13   : > { %s839_s30 = smov (!%p196_p10), 120   ;;  %p616_p0 = scmp.ne.s32.totalorder (!%p196_p10), %s819_s18, 0 }
  0x17   : > { %s946_s8 = scalar_select %p233_p12, %s819_s18, 3 }
  0x18   : > { %s230_s9 = scalar_select %p229_p13, %s823_s19, 1 }
  0x19   : > { %s624_s10 = sshll.u32 %s946_s8, 4 }
  0x1a   : > { %s237_s13 = scalar_lea.vmem %s1033_s1, %s624_s10  ;;  %s606_s14 = sshll.u32 %s230_s9, 2 }
  0x1b   : > { %v735_v1 = vld [vmem:[%s237_s13] sm:$0xff]   ;;  %v736_v2 = vld [vmem:[%s237_s13 + $0x8] sm:$0xff]   ;;  %s232_s29 = scalar_lea.vmem %s1032_s0, %s606_s14  ;;  %s840_s9 = smov 112  }
  0x1c   : > { %635 = vmatpush3.bf16.msra.mxu0 %v735_v1  ;;  %v243_v3 = vld [vmem:[%s232_s29] sm:$0xf]  ;;  %s609_s10 = sshll.u32 %s946_s8, 2  ;;  %s228_s8 = scalar_lea.vmem [#allocation3], %s940_s7 }
  0x1d   : > { %636 = vmatprep.subr.bf16.mxu0 %v837_v0  ;;  %s241_s13 = scalar_lea.vmem %s1034_s2, %s609_s10 }
  0x1e   : > { %v419_v23 = vld [vmem:[%s241_s13] sm:$0xf] }
  0x1f   : > { %v424_v24 = vsel %vm374_vm3, %v419_v23, 0 }
  0x20   : > { %637 = vmatpush3.bf16.msra.mxu0 %v736_v2 }
  0x21   : > { %648 = vmatprep.subr.bf16.mxu0 %v837_v0 }
  0x23   : > { %639 = vmatmul.mubr.msk.bf16.vlgmr.msra.gmra.mrb[0].mxu0 %vm260_vm1, %v243_v3 }
  0x24   : > { %650 = vmatprep.mubr.msk.bf16.mxu0 %vm838_vm0, %v837_v0 }
  0xf6   : > { %v298_v4 = vpop.f32.mrb[0].mxu0 }
  0xf7   : > { %v640_v5 = vpop.f32.mrb[1].mxu0  ;;  %v306_v6 = vpack.c.bf16 %v298_v4, %v298_v4  ;;  %v304_v11 = vmul.f32 0.35355338, %v298_v4 }
  0xf8   : > { %v301_v7 = vpop.f32.mrb[2].mxu0 }
  0xf9   : > { %308 = vrot.lane.b32.xlu0 %v306_v6, %s839_s30  ;;  %v641_v8 = vpop.f32.mrb[3].mxu0  ;;  %v305_v12 = vpack.c.bf16 %v304_v11, %v304_v11 }
 0x16b   : > { %v309_v9 = vpop.permute.xlu0 %308 }
 0x16c   : > { %v315_v10 = vsel %vm310_vm2, %v309_v9, 0 }
 0x16d   : > { %643 = vmatpush3.bf16.xpose.msra.mxu1 %v315_v10 }
 0x16e   : > { %654 = vmatprep.subr.bf16.mxu1 %v837_v0 }
 0x174   : > { %645 = vmatmul.mubr.msk.bf16.vlgmr.msra.gmra.mrb[0].mxu1 %vm310_vm2, %v305_v12 }
 0x175   : > { %656 = vmatprep.mubr.msk.bf16.mxu1 %vm838_vm0, %v837_v0  ;;  %655 = vmatpush3.bf16.msra.mxu1 %v424_v24 }
 0x247   : > { %v351_v13 = vpop.f32.mrb[0].mxu1 }
 0x248   : > { %v646_v14 = vpop.f32.mrb[1].mxu1  ;;  %v357_v15 = vsel %vm310_vm2, %v351_v13, -inf }
 0x249   : > { %358 = vmax.xlane.f32.xlu0 %v357_v15  ;;  %v354_v16 = vpop.f32.mrb[2].mxu1 }
 0x24a   : > { %v647_v17 = vpop.f32.mrb[3].mxu1 }
 0x2d6   : > { %v359_v18 = vpop.xlane.xlu0 %358 }
 0x2d7   : > { %v360_v19 = vsub.f32 %v351_v13, %v359_v18 }
 0x2d9   : > { %v361_v20 = vmul.f32 1.442695, %v360_v19 }
 0x2db   : > { %737 = vpow2.f32 %v361_v20 }
 0x2e5   : > { %v738_v21 = vpop.eup %737 }
 0x2e6   : > { %v363_v22 = vsel %vm310_vm2, %v738_v21, 0.0 }
 0x2e7   : > { %364 = vadd.xlane.f32.xlu1 %v363_v22 }
 0x2f8   : > { %369 = vrot.lane.b32.xlu1 %v306_v6, %s840_s9 }
 0x374   : > { %v365_v25 = vpop.xlane.xlu1 %364 }
 0x375   : > { %739 = vrcp.f32 %v365_v25 }
 0x378   : > { %v370_v26 = vpop.permute.xlu1 %369 }
 0x379   : > { %v376_v27 = vsel %vm374_vm3, %v370_v26, 0 }
 0x37a   : > { %649 = vmatpush3.bf16.msra.mxu0 %v376_v27 }
 0x37f   : > { %v740_v28 = vpop.eup %739 }
 0x380   : > { %v367_v29 = vmul.f32 %v740_v28, %v738_v21 }
 0x382   : > { %v368_v30 = vpack.c.bf16 %v367_v29, %v367_v29 }
 0x384   : > { %651 = vmatmul.mubr.msk.bf16.vlgmr.msra.gmra.mrb[4].mxu0 %vm310_vm2, %v368_v30 }
 0x457   : > { %v412_v31 = vpop.f32.mrb[4].mxu0 }
 0x458   : > { %v418_v32 = vpack.c.bf16 %v412_v31, %v412_v31  ;;  %v652_v33 = vpop.f32.mrb[5].mxu0 }
 0x459   : > { %v415_v34 = vpop.f32.mrb[6].mxu0 }
 0x45a   : > { %v653_v35 = vpop.f32.mrb[7].mxu0  ;;  %657 = vmatmul.mubr.msk.bf16.vlgmr.msra.gmra.mrb[4].mxu1 %vm310_vm2, %v418_v32 }
 0x52a   : > { %469 = sbr.rel (%p616_p0) target bundleno = 1329 (0x531), region = 40 }
 0x52d   : > { %v460_v36 = vpop.f32.mrb[4].mxu1 }
 0x52e   : > { %v658_v37 = vpop.f32.mrb[5].mxu1  ;;  %470 = vst.msk [vmem:[#allocation2] sm:$0xff] (!%p616_p0), %vm260_vm1, %v460_v36 }
 0x52f   : > { %v463_v38 = vpop.f32.mrb[6].mxu1 }
 0x530   : > { %v659_v39 = vpop.f32.mrb[7].mxu1 }
 0x531 PF: > { %p617_p1 = scmp.le.s32.totalorder %s819_s18, 0 }
 0x533   : > { %474 = sbr.rel (%p617_p1) target bundleno = 1338 (0x53a), region = 44 }
 0x535   : > { %v475_v40 = vld [vmem:[#allocation2] sm:$0xff] (!%p617_p1) }
 0x536   : > { %v476_v41 = vadd.f32 (!%p617_p1), %v475_v40, %v460_v36 }
 0x538   : > { %477 = vst.msk [vmem:[#allocation2] sm:$0xff] (!%p617_p1), %vm260_vm1, %v476_v41 }
 0x53a PF: > { %p618_p2 = scmp.ne.s32.totalorder %s819_s18, 3 }
 0x53b   : > { %v619_v43 = vld [vmem:[%s1035_s3] ss:$0 sm:$0xff] (!%p618_p2) }
 0x53c   : > { %481 = sbr.rel (%p618_p2) target bundleno = 1347 (0x543), region = 48 }
 0x53f   : > { %v482_v42 = vld [vmem:[#allocation2] sm:$0xff] (!%p618_p2) }
 0x540   : > { %v490_v44 = vadd.f32 (!%p618_p2), %v619_v43, %v482_v42 }
 0x542   : > { %491 = vst.msk [vmem:[%s228_s8] sm:$0xff] (!%p618_p2), %vm260_vm1, %v490_v44 }
 0x543 PF: > { %s621_s23 = sshll.u32 %s823_s19, 7  ;;  %s506_s18 = sshll.u32 %s228_s8, 4  ;;  %s507_s18 = int_to_ptr.vmem [resolvable:$true] %s506_s18 }
 0x544   : > { %s983_s30 = scalar_lea.hbm %s1036_s4, %s621_s23  ;;  %s493_s9 = scalar_lea.sflag [#allocation4], %s226_s6 }
 0x545   : > { %s741_s10 = scalar_lea.vmem %s507_s18, 128  ;;  %s841_s11 = smov [#allocation3]  }
 0x546   : > { %p742_p4 = scmp.ne.s32.totalorder %s507_s18, %s741_s10  ;;  %s745_s12 = sshll.u32 %s841_s11, 4  ;;  %s746_s12 = int_to_ptr.vmem [resolvable:$false] %s745_s12 }
 0x547   : > { %s747_s13 = scalar_lea.vmem %s746_s12, 256  ;;  %p748_p7 = scmp.lt.s32.totalorder %s507_s18, %s746_s12 }
 0x548   : > { %p743_p5 = pnand %p742_p4, %p916_p3  ;;  %p749_p8 = scmp.lt.s32.totalorder %s747_s13, %s741_s10 }
 0x54a   : > { %p744_p6 = pneg %p743_p5  ;;  %p750_p10 = por %p749_p8, %p748_p7 }
 0x54c   : > { %p751_p11 = pnand %p750_p10, %p744_p6 }
 0x54e   : > { %754 = shalt.err (!%p751_p11)
}
 0x54f   : > { %s755_s19 = scalar_lea.hbm %s983_s30, 128  ;;  %s759_s14 = scalar_lea.hbm %s1036_s4, 256 }
 0x550   : > { %p756_p12 = scmp.ne.s32.totalorder %s983_s30, %s755_s19  ;;  %p760_p1 = scmp.lt.u32.totalorder %s983_s30, %s1036_s4 }
 0x551   : > { %p761_p2 = scmp.lt.u32.totalorder %s759_s14, %s755_s19  ;;  %p763_p5 = scmp.lt.u32.totalorder %s755_s19, %s983_s30 }
 0x552   : > { %p757_p13 = pnand %p756_p12, %p916_p3 }
 0x553   : > { %p762_p4 = por %p761_p2, %p760_p1 }
 0x554   : > { %p758_p0 = pneg %p757_p13 }
 0x555   : > { %p764_p6 = por %p763_p5, %p762_p4 }
 0x557   : > { %p765_p7 = pnand %p764_p6, %p758_p0 }
 0x559   : > { %768 = shalt.err (!%p765_p7)
}
 0x55a   : > { %660 = dma.vmem_to_hbm [thread:$0]  (%p916_p3), %s507_s18, 128, %s983_s30, %s493_s9  }
 0x55b PF: > { %p666_p8 = scmp.ge.s32.totalorder %s835_s22, 2  ;;  %s518_s24 = sand.u32 1, %s807_s15  }
 0x55c   : > { %s519_s29 = scalar_lea.sflag [#allocation4], %s518_s24 }
 0x55d   : > { %p663_p10 = pnand %p666_p8, %p926_p9 }
 0x55f   : > { %802 = dma.done.wait (!%p663_p10), %s519_s29, 128  }
 0x560   : > { %804 = vsyncadd (!%p663_p10), %s519_s29, 4294967168  ;;  %s17_s22 = sadd.s32 1, %s835_s22   ;;  %s1039_s15 = smov %s811_s16 }
 0x561   : > { %p14_p11 = scmp.ge.s32.totalorder %s17_s22, 10   ;;  %s1040_s16 = smov %s815_s17 }
 0x562   : > { %s1041_s17 = smov %s934_s5  ;;  %s1042_s18 = smov %s827_s20 }
 0x563   : > { %s1043_s19 = smov %s831_s21  ;;  %s1044_s20 = smov %s1047_s25 }
 0x564   : > { %s1045_s21 = smov %s1051_s26  ;;  %16 = sbr.rel (!%p14_p11) target bundleno = 5 (0x5), region = 89 }
 0x56b   :  { %524 = vsyncpa [#allocation4], 1 }
 0x56c   :  { %526 = vsyncpa [#allocation4 + $0x1], 1 }

</bundles_post_ra>
